<compile_context>
chip_gen: v7x
topology: tpu7x:2x2x1
jax: 0.10.0
libtpu: 0.0.40
codegen_flags: <defaults>
</compile_context>

<pallas_src>
import functools

import jax
import jax.numpy as jnp
from jax.experimental import pallas as pl
from jax.experimental.pallas import tpu as pltpu


def _round_up(x, m):
    return ((x + m - 1) // m) * m


def layernorm_kernel(x_ref, a_ref, b_ref, o_ref, *, eps, d_model):
    x = x_ref[...].astype(jnp.float32)                       # (tile_rows, d_model)
    inv_d = jnp.float32(1.0 / d_model)

    s1 = jnp.sum(x, axis=-1, keepdims=True)
    s2 = jnp.sum(x * x, axis=-1, keepdims=True)
    mean = s1 * inv_d                                        # Media
    var = jnp.maximum(s2 * inv_d - mean * mean, 0.0)         # Varianza (biased)

    # NOTE: eps is added OUTSIDE the sqrt, matching the custom PyTorch module
    # (this differs from torch.nn.LayerNorm which uses rsqrt(var + eps)).
    inv_std = 1.0 / (jnp.sqrt(var) + eps)                    # exact; tiny column

    a = a_ref[...].astype(jnp.float32)                       # (1, d_model)
    b = b_ref[...].astype(jnp.float32)                       # (1, d_model)
    o_ref[...] = ((x - mean) * inv_std * a + b).astype(o_ref.dtype)


def _vmem_budget():
    """Returns (scoped vmem limit to request, byte budget for tile buffers)."""
    try:
        phys = int(pltpu.get_tpu_info().vmem_capacity_bytes)
    except Exception:
        phys = 128 * 1024 * 1024                             # v5e/v6e physical VMEM
    # v5e/v6e (128 MiB physical) -> 96 MiB scoped; v7x (64 MiB) -> 48 MiB scoped.
    vmem_limit = min(int(phys * 0.75), 96 * 1024 * 1024)
    budget = int(vmem_limit * 0.8)                           # headroom for Mosaic scratch
    return vmem_limit, budget


def _pick_tile_rows(rows, d_model, in_bytes, budget):
    sublane = 8 * max(1, 4 // in_bytes)                      # 8 for f32, 16 for bf16

    # VMEM per row: double-buffered input + double-buffered output
    # + ~4 full-tile f32 temporaries live inside the kernel body.
    per_row = d_model * (2 * in_bytes + 2 * in_bytes + 4 * 4)
    vmem_rows = max(sublane, budget // per_row)

    # Byte-based tile cap (~4 MiB of input per tile): amortizes the ~0.35 us
    # per-grid-step overhead regardless of d_model, instead of a fixed row cap.
    cap_rows = max(sublane, (4 * 1024 * 1024) // max(1, d_model * in_bytes))

    tile = min(vmem_rows, cap_rows)

    # >= 2 grid steps per TensorCore (assume up to 2 TCs, i.e. >= 4 total) so
    # each core keeps its DMA pipeline fed. Harmless extra steps on 1-TC chips.
    min_steps = 4
    if rows >= min_steps * sublane:
        tile = min(tile, rows // min_steps)

    tile = max(sublane, (tile // sublane) * sublane)
    return min(tile, max(sublane, _round_up(rows, sublane)))


def layer_norm(x, a, b, *, eps=1e-6, tile_rows=None):
    """x: (batch, seq, d_model); a, b: (d_model,). Returns same shape/dtype as x."""
    batch, seq, d_model = x.shape
    rows = batch * seq
    in_bytes = jnp.dtype(x.dtype).itemsize

    # No host-side padding of x: rows can be non-divisible (partial last block
    # handled by Pallas), and the feature axis uses the full-extent d_model
    # block dim (full-array dims are exempt from the 128-lane rule).
    x2 = x.reshape(rows, d_model)
    a2 = a.reshape(1, d_model)
    b2 = b.reshape(1, d_model)

    vmem_limit, budget = _vmem_budget()
    if tile_rows is None:
        tile_rows = _pick_tile_rows(rows, d_model, in_bytes, budget)

    grid = (pl.cdiv(rows, tile_rows),)
    kernel = functools.partial(layernorm_kernel, eps=eps, d_model=d_model)

    out = pl.pallas_call(
        kernel,
        out_shape=jax.ShapeDtypeStruct((rows, d_model), x.dtype),
        grid_spec=pltpu.PrefetchScalarGridSpec(
            num_scalar_prefetch=0,
            grid=grid,
            in_specs=[
                pl.BlockSpec((tile_rows, d_model), lambda i: (i, 0)),
                pl.BlockSpec((1, d_model), lambda i: (0, 0)),
                pl.BlockSpec((1, d_model), lambda i: (0, 0)),
            ],
            out_specs=pl.BlockSpec((tile_rows, d_model), lambda i: (i, 0)),
        ),
        compiler_params=pltpu.CompilerParams(
            dimension_semantics=("parallel",),
            vmem_limit_bytes=vmem_limit,
        ),
    )(x2, a2, b2)

    return out.reshape(batch, seq, d_model)


if __name__ == "__main__":
    key = jax.random.PRNGKey(0)
    batch, seq, d_model = 2, 8, 32

    x = jax.random.normal(key, (batch, seq, d_model), dtype=jnp.float32)
    # Matches nn.Parameter(torch.ones(size)) / nn.Parameter(torch.zeros(size))
    a = jnp.ones((d_model,), dtype=jnp.float32)
    b = jnp.zeros((d_model,), dtype=jnp.float32)

    out = jax.block_until_ready(layer_norm(x, a, b, eps=1e-6))

    # Plain-JAX reference with the same semantics as the PyTorch forward.
    mean = jnp.mean(x, axis=-1, keepdims=True)
    var = jnp.mean((x - mean) ** 2, axis=-1, keepdims=True)
    ref = a * ((x - mean) / (jnp.sqrt(var) + 1e-6)) + b

    assert out.shape == ref.shape and out.dtype == ref.dtype
    assert jnp.allclose(out, ref, atol=1e-5, rtol=1e-5), "mismatch vs reference"
    print("KERNEL_OK")
</pallas_src>

<mosaic_0001>
module attributes {stable_mosaic.version = 11 : i64} {
  func.func @layernorm_kernel(%arg0: i32, %arg1: memref<16x32xf32, #tpu.memory_space<vmem>>, %arg2: memref<1x32xf32, #tpu.memory_space<vmem>>, %arg3: memref<1x32xf32, #tpu.memory_space<vmem>>, %arg4: memref<16x32xf32, #tpu.memory_space<vmem>>) attributes {dimension_semantics = [#tpu.dimension_semantics<parallel>], iteration_bounds = array<i64: 1>, scalar_prefetch = 0 : i64, scratch_operands = 0 : i64, tpu.core_type = #tpu.core_type<tc>, window_params = [{transform_indices = @transform_0, window_bounds = array<i64: 16, 32>}, {pipeline_mode = #tpu.pipeline_mode<synchronous>, transform_indices = @transform_1, window_bounds = array<i64: 1, 32>}, {pipeline_mode = #tpu.pipeline_mode<synchronous>, transform_indices = @transform_2, window_bounds = array<i64: 1, 32>}, {transform_indices = @transform_3, window_bounds = array<i64: 16, 32>}]} {
    %c0 = arith.constant 0 : index
    %c0_0 = arith.constant 0 : index
    %0 = vector.load %arg1[%c0, %c0_0] : memref<16x32xf32, #tpu.memory_space<vmem>>, vector<16x32xf32>
    %cst = arith.constant dense<0.000000e+00> : vector<16xf32>
    %1 = vector.multi_reduction <add>, %0, %cst [1] : vector<16x32xf32> to vector<16xf32>
    %2 = vector.shape_cast %1 : vector<16xf32> to vector<16x1xf32>
    %3 = arith.mulf %0, %0 : vector<16x32xf32>
    %cst_1 = arith.constant dense<0.000000e+00> : vector<16xf32>
    %4 = vector.multi_reduction <add>, %3, %cst_1 [1] : vector<16x32xf32> to vector<16xf32>
    %5 = vector.shape_cast %4 : vector<16xf32> to vector<16x1xf32>
    %cst_2 = arith.constant 3.125000e-02 : f32
    %6 = vector.broadcast %cst_2 : f32 to vector<16x1xf32>
    %7 = arith.mulf %2, %6 : vector<16x1xf32>
    %cst_3 = arith.constant 3.125000e-02 : f32
    %8 = vector.broadcast %cst_3 : f32 to vector<16x1xf32>
    %9 = arith.mulf %5, %8 : vector<16x1xf32>
    %10 = arith.mulf %7, %7 : vector<16x1xf32>
    %11 = arith.subf %9, %10 : vector<16x1xf32>
    %cst_4 = arith.constant 0.000000e+00 : f32
    %12 = vector.broadcast %cst_4 : f32 to vector<16x1xf32>
    %13 = arith.maximumf %11, %12 : vector<16x1xf32>
    %14 = math.sqrt %13 : vector<16x1xf32>
    %cst_5 = arith.constant 9.99999997E-7 : f32
    %15 = vector.broadcast %cst_5 : f32 to vector<16x1xf32>
    %16 = arith.addf %14, %15 : vector<16x1xf32>
    %cst_6 = arith.constant 1.000000e+00 : f32
    %17 = vector.broadcast %cst_6 : f32 to vector<16x1xf32>
    %18 = arith.divf %17, %16 : vector<16x1xf32>
    %c0_7 = arith.constant 0 : index
    %c0_8 = arith.constant 0 : index
    %19 = vector.load %arg2[%c0_7, %c0_8] : memref<1x32xf32, #tpu.memory_space<vmem>>, vector<1x32xf32>
    %c0_9 = arith.constant 0 : index
    %c0_10 = arith.constant 0 : index
    %20 = vector.load %arg3[%c0_9, %c0_10] : memref<1x32xf32, #tpu.memory_space<vmem>>, vector<1x32xf32>
    %21 = vector.broadcast %7 : vector<16x1xf32> to vector<16x32xf32>
    %22 = arith.subf %0, %21 : vector<16x32xf32>
    %23 = vector.broadcast %18 : vector<16x1xf32> to vector<16x32xf32>
    %24 = arith.mulf %22, %23 : vector<16x32xf32>
    %25 = vector.broadcast %19 : vector<1x32xf32> to vector<16x32xf32>
    %26 = arith.mulf %24, %25 : vector<16x32xf32>
    %27 = vector.broadcast %20 : vector<1x32xf32> to vector<16x32xf32>
    %28 = arith.addf %26, %27 : vector<16x32xf32>
    %c0_11 = arith.constant 0 : index
    %c0_12 = arith.constant 0 : index
    %29 = vector.load %arg4[%c0_11, %c0_12] : memref<16x32xf32, #tpu.memory_space<vmem>>, vector<16x32xf32>
    tpu.vector_store %arg4[%c0_11, %c0_12], %28 {strides = array<i32>} : memref<16x32xf32, #tpu.memory_space<vmem>>, vector<16x32xf32>,
    return
  }
  func.func @transform_0(%arg0: i32) -> (i32, i32) {
    %c0_i32 = arith.constant 0 : i32
    %c0_i32_0 = arith.constant 0 : i32
    return %arg0, %c0_i32 : i32, i32
  }
  func.func @transform_1(%arg0: i32) -> (i32, i32) {
    %c0_i32 = arith.constant 0 : i32
    %c0_i32_0 = arith.constant 0 : i32
    %c0_i32_1 = arith.constant 0 : i32
    return %c0_i32, %c0_i32_0 : i32, i32
  }
  func.func @transform_2(%arg0: i32) -> (i32, i32) {
    %c0_i32 = arith.constant 0 : i32
    %c0_i32_0 = arith.constant 0 : i32
    %c0_i32_1 = arith.constant 0 : i32
    return %c0_i32, %c0_i32_0 : i32, i32
  }
  func.func @transform_3(%arg0: i32) -> (i32, i32) {
    %c0_i32 = arith.constant 0 : i32
    %c0_i32_0 = arith.constant 0 : i32
    return %arg0, %c0_i32 : i32, i32
  }
}

</mosaic_0001>

<bundles_post_ra>
// kernel: tpu_custom_call.1
= control target key start
LH: loop header
LB: loop body
LE: loop exit
PB: predicated region body
PF: predicated region fallthrough
CT: control target
= control target key end

     0   :  { %8 = vsyncpa [#allocation3], 0  ;;  %s344_s0 = inlined_call_operand.hbm [shape: f32[16,32], index: 0, kind: input, shape index: {}]   ;;  %s345_s1 = inlined_call_operand.hbm [shape: f32[1,32], index: 1, kind: input, shape index: {}]   ;;  %s346_s2 = inlined_call_operand.hbm [shape: f32[1,32], index: 2, kind: input, shape index: {}]   ;;  %s347_s3 = inlined_call_operand.hbm [shape: f32[16,32], index: 3, kind: output, shape index: {}]  }
   0x1   :  { %9 = vsyncpa [#allocation6], 0 }
   0x2   :  { %10 = vsyncpa [#allocation4], 0  ;;  %s251_s12 = smov [#allocation5]   ;;  %s252_s14 = smov [#allocation2]  }
   0x3   :  { %s29_s13 = sshll.u32 %s251_s12, 4  ;;  %s16_s15 = sshll.u32 %s252_s14, 4  ;;  %s30_s13 = int_to_ptr.vmem [resolvable:$true] %s29_s13  ;;  %s277_s15 = int_to_ptr.vmem [resolvable:$true] %s16_s15 }
   0x4   :  { %s157_s18 = scalar_lea.hbm %s345_s1, 16 }
   0x5   :  { %p158_p0 = scmp.ne.s32.totalorder %s345_s1, %s157_s18  ;;  %p161_p1 = scmp.lt.u32.totalorder %s157_s18, %s345_s1 }
   0x7   :  { %p163_p2 = pnand %p161_p1, %p158_p0 }
   0x9   :  { %166 = shalt.err (!%p163_p2)
}
   0xa   :  { %s167_s23 = scalar_lea.vmem %s30_s13, 16  ;;  %s171_s24 = scalar_lea.vmem %s30_s13, 32 }
   0xb   :  { %p168_p3 = scmp.ne.s32.totalorder %s30_s13, %s167_s23  ;;  %p172_p4 = scmp.lt.s32.totalorder %s30_s13, %s30_s13 }
   0xc   :  { %p173_p5 = scmp.lt.s32.totalorder %s171_s24, %s167_s23 }
   0xe   :  { %p174_p6 = por %p173_p5, %p172_p4 }
  0x10   :  { %p175_p7 = pnand %p174_p6, %p168_p3 }
  0x12   :  { %178 = shalt.err (!%p175_p7)
}
  0x13   :  { %32 = dma.hbm_to_vmem [thread:$0]  %s345_s1, 16, %s30_s13, [#allocation6]  }
  0x14   :  { %s179_s29 = scalar_lea.hbm %s344_s0, 256 }
  0x15   :  { %p180_p8 = scmp.ne.s32.totalorder %s344_s0, %s179_s29  ;;  %p183_p9 = scmp.lt.u32.totalorder %s179_s29, %s344_s0 }
  0x17   :  { %p185_p10 = pnand %p183_p9, %p180_p8 }
  0x19   :  { %188 = shalt.err (!%p185_p10)
}
  0x1a   :  { %s189_s7 = scalar_lea.vmem %s277_s15, 256  ;;  %p194_p12 = scmp.lt.s32.totalorder %s277_s15, %s277_s15 }
  0x1b   :  { %p190_p11 = scmp.ne.s32.totalorder %s277_s15, %s189_s7  ;;  %p195_p13 = scmp.lt.s32.totalorder %s189_s7, %s189_s7 }
  0x1d   :  { %p196_p0 = por %p195_p13, %p194_p12 }
  0x1f   :  { %p197_p1 = pnand %p196_p0, %p190_p11 }
  0x21   :  { %200 = shalt.err (!%p197_p1)
}
  0x22   :  { %s253_s1 = smov 128   ;;  %s254_s8 = smov 8  }
  0x23   :  { %22 = dma.hbm_to_vmem [thread:$0]  %s344_s0, 256, %s277_s15, [#allocation3], %s253_s1, %s253_s1, %s254_s8  }
  0x24   :  { %s255_s11 = smov [#allocation7]   ;;  %s201_s16 = scalar_lea.hbm %s346_s2, 16 }
  0x25   :  { %s39_s12 = sshll.u32 %s255_s11, 4  ;;  %p202_p2 = scmp.ne.s32.totalorder %s346_s2, %s201_s16  ;;  %s40_s12 = int_to_ptr.vmem [resolvable:$true] %s39_s12 }
  0x26   :  { %p205_p3 = scmp.lt.u32.totalorder %s201_s16, %s346_s2 }
  0x28   :  { %p207_p4 = pnand %p205_p3, %p202_p2 }
  0x2a   :  { %210 = shalt.err (!%p207_p4)
}
  0x2b   :  { %s211_s21 = scalar_lea.vmem %s40_s12, 16  ;;  %s215_s0 = scalar_lea.vmem %s40_s12, 32 }
  0x2c   :  { %p212_p5 = scmp.ne.s32.totalorder %s40_s12, %s211_s21  ;;  %p216_p6 = scmp.lt.s32.totalorder %s40_s12, %s40_s12 }
  0x2d   :  { %p217_p7 = scmp.lt.s32.totalorder %s215_s0, %s211_s21 }
  0x2f   :  { %p218_p8 = por %p217_p7, %p216_p6 }
  0x31   :  { %p219_p9 = pnand %p218_p8, %p212_p5 }
  0x33   :  { %222 = shalt.err (!%p219_p9)
}
  0x34   :  { %42 = dma.hbm_to_vmem [thread:$0]  %s346_s2, 16, %s40_s12, [#allocation6]  }
  0x35   :  { %245 = dma.done.wait [#allocation3], 256  }
  0x36   :  { %246 = vsyncadd [#allocation3], 4294967040 }
  0x37   :  { %247 = dma.done.wait [#allocation6], 32  }
  0x38   :  { %248 = vsyncadd [#allocation6], 4294967264  ;;  %vm54_vm0 = vcmask 261120   ;;  %v52_v0 = vld [vmem:[#allocation2] sm:$0xff]  ;;  %v53_v1 = vld [vmem:[#allocation2 + $0x8] sm:$0xff]  ;;  %s256_s2 = smov [#allocation8]  }
  0x39   :  { %v55_v2 = vsel %vm54_vm0, %v52_v0, 0.0  ;;  %v61_v3 = vmul.f32 %v52_v0, %v52_v0  ;;  %v62_v4 = vmul.f32 %v53_v1, %v53_v1  ;;  %v58_v6 = vsel %vm54_vm0, %v53_v1, 0.0  ;;  %v141_v36 = vld [vmem:[#allocation5] ss:$0 sm:$0xff]  ;;  %v142_v38 = vld [vmem:[#allocation7] ss:$0 sm:$0xff] }
  0x3a   :  { %56 = vadd.xlane.f32.xlu0 %v55_v2  ;;  %s128_s23 = sshll.u32 %s256_s2, 4  ;;  %s129_s23 = int_to_ptr.vmem [resolvable:$true] %s128_s23 }
  0x3b   :  { %v63_v5 = vsel %vm54_vm0, %v61_v3, 0.0  ;;  %v66_v7 = vsel %vm54_vm0, %v62_v4, 0.0  ;;  %s223_s24 = scalar_lea.vmem %s129_s23, 256  ;;  %p228_p11 = scmp.lt.s32.totalorder %s129_s23, %s129_s23 }
  0x3c   :  { %64 = vadd.xlane.f32.xlu1 %v63_v5  ;;  %p224_p10 = scmp.ne.s32.totalorder %s129_s23, %s223_s24  ;;  %p229_p12 = scmp.lt.s32.totalorder %s223_s24, %s223_s24 }
  0x3e   :  { %59 = vadd.xlane.f32.xlu0 %v58_v6  ;;  %p230_p13 = por %p229_p12, %p228_p11 }
  0x40   :  { %67 = vadd.xlane.f32.xlu1 %v66_v7  ;;  %p231_p0 = pnand %p230_p13, %p224_p10 }
  0xc7   :  { %v57_v8 = vpop.xlane.xlu0 %56 }
  0xc8   :  { %v69_v9 = vmul.f32 0.03125, %v57_v8 }
  0xc9   :  { %v65_v10 = vpop.xlane.xlu1 %64 }
  0xca   :  { %v73_v11 = vmul.f32 %v69_v9, %v69_v9  ;;  %v71_v12 = vmul.f32 0.03125, %v65_v10  ;;  %v101_v34 = vsub.f32 %v52_v0, %v69_v9 }
  0xcb   :  { %v60_v13 = vpop.xlane.xlu0 %59 }
  0xcc   :  { %v75_v14 = vsub.f32 %v71_v12, %v73_v11  ;;  %v70_v15 = vmul.f32 0.03125, %v60_v13 }
  0xcd   :  { %v68_v16 = vpop.xlane.xlu1 %67 }
  0xce   :  { %v77_v17 = vmax.f32 %v75_v14, 0.0  ;;  %v74_v18 = vmul.f32 %v70_v15, %v70_v15  ;;  %v72_v19 = vmul.f32 0.03125, %v68_v16  ;;  %v102_v40 = vsub.f32 %v53_v1, %v70_v15 }
  0xd0   :  { %149 = vrsqrt.f32 %v77_v17  ;;  %v76_v20 = vsub.f32 %v72_v19, %v74_v18  ;;  %vm81_vm1 = vcmp.eq.f32.partialorder %v77_v17, inf  ;;  %v84_v24 = vand.u32 2147483648, %v77_v17 }
  0xd1   :  { %vm83_vm2 = vcmp.eq.f32.partialorder %v77_v17, 0.0 }
  0xd2   :  { %v78_v21 = vmax.f32 %v76_v20, 0.0 }
  0xd4   :  { %151 = vrsqrt.f32 %v78_v21  ;;  %vm88_vm3 = vcmp.eq.f32.partialorder %v78_v21, inf  ;;  %v91_v30 = vand.u32 2147483648, %v78_v21  ;;  %vm90_vm4 = vcmp.eq.f32.partialorder %v78_v21, 0.0 }
  0xda   :  { %v150_v22 = vpop.eup %149 }
  0xdb   :  { %v80_v23 = vmul.f32 %v150_v22, %v77_v17 }
  0xdd   :  { %v82_v25 = vsel %vm81_vm1, %v77_v17, %v80_v23 }
  0xde   :  { %v85_v26 = vsel %vm83_vm2, %v84_v24, %v82_v25  ;;  %v152_v27 = vpop.eup %151 }
  0xdf   :  { %v93_v28 = vadd.f32 1e-06, %v85_v26  ;;  %v87_v29 = vmul.f32 %v152_v27, %v78_v21 }
  0xe1   :  { %153 = vrcp.f32 %v93_v28  ;;  %v89_v31 = vsel %vm88_vm3, %v78_v21, %v87_v29 }
  0xe2   :  { %v92_v32 = vsel %vm90_vm4, %v91_v30, %v89_v31 }
  0xe3   :  { %v94_v33 = vadd.f32 1e-06, %v92_v32 }
  0xe5   :  { %155 = vrcp.f32 %v94_v33 }
  0xeb   :  { %v154_v35 = vpop.eup %153 }
  0xec   :  { %v103_v37 = vmul.f32 %v154_v35, %v101_v34 }
  0xee   :  { %v111_v39 = vmul.f32 %v141_v36, %v103_v37 }
  0xef   :  { %v156_v41 = vpop.eup %155 }
  0xf0   :  { %v119_v42 = vadd.f32 %v142_v38, %v111_v39  ;;  %v104_v43 = vmul.f32 %v156_v41, %v102_v40 }
  0xf2   :  { %121 = vst.msk [vmem:[#allocation8] sm:$0xff] %vm54_vm0, %v119_v42  ;;  %v112_v44 = vmul.f32 %v141_v36, %v104_v43 }
  0xf4   :  { %v120_v45 = vadd.f32 %v142_v38, %v112_v44 }
  0xf6   :  { %122 = vst.msk [vmem:[#allocation8 + $0x8] sm:$0xff] %vm54_vm0, %v120_v45 }
  0xf7   :  { %234 = shalt.err (!%p231_p0)
}
  0xf8   :  { %s235_s27 = scalar_lea.hbm %s347_s3, 256 }
  0xf9   :  { %p236_p1 = scmp.ne.s32.totalorder %s347_s3, %s235_s27  ;;  %p239_p2 = scmp.lt.u32.totalorder %s235_s27, %s347_s3 }
  0xfb   :  { %p241_p3 = pnand %p239_p2, %p236_p1 }
  0xfd   :  { %244 = shalt.err (!%p241_p3)
}
  0xfe   :  { %134 = dma.vmem_to_hbm [thread:$0]  %s129_s23, 256, %s347_s3, [#allocation4], %s253_s1, %s253_s1, %s254_s8  }
  0xff   :  { %249 = dma.done.wait [#allocation4], 256  }
 0x100   :  { %250 = vsyncadd [#allocation4], 4294967040 }
 0x101   :  { %138 = vsyncpa [#allocation3], 1 }
 0x102   :  { %139 = vsyncpa [#allocation6], 1 }
 0x103   :  { %140 = vsyncpa [#allocation4], 1 }

</bundles_post_ra>
